<compile_context>
chip_gen: v7x
topology: tpu7x:2x2x1
jax: 0.10.0
libtpu: 0.0.40
codegen_flags: <defaults>
</compile_context>

<pallas_src>
import jax
import jax.numpy as jnp
from jax import lax
from jax.experimental import pallas as pl
from jax.experimental.pallas import tpu as pltpu

_LANE = 128


def _round_up(x, m):
    return ((x + m - 1) // m) * m


# ---------------------------------------------------------------------------
# Kernel 1: weight-streaming encoder matmul    feats = x @ w_enc + b_enc
#   grid = (n_d "parallel", n_k "arbitrary"); output block is the accumulator.
# ---------------------------------------------------------------------------
def _encode_kernel(x_ref, w_enc_ref, b_enc_ref, feats_ref):
    k = pl.program_id(1)

    @pl.when(k == 0)
    def _init():
        feats_ref[...] = jnp.broadcast_to(b_enc_ref[...], feats_ref.shape)

    feats_ref[...] += jnp.dot(x_ref[...], w_enc_ref[...],
                              preferred_element_type=jnp.float32)


# ---------------------------------------------------------------------------
# Kernel 2: tiny epilogue    enc = l2_normalize(feats); logits = enc @ w_fc + b
#   Single un-tiled step; keeps fc1 weights out of VMEM during the streaming.
# ---------------------------------------------------------------------------
def _norm_fc_kernel(feats_ref, w_fc_ref, b_fc_ref, logits_ref, enc_ref):
    feats = feats_ref[...]
    # F.normalize(p=2, dim=-1): x / max(||x||, 1e-12) == x * rsqrt(max(sq, 1e-24))
    sq = jnp.sum(feats * feats, axis=-1, keepdims=True)
    feats_n = feats * lax.rsqrt(jnp.maximum(sq, 1e-24))
    enc_ref[...] = feats_n.astype(enc_ref.dtype)
    logits_ref[...] = (jnp.dot(feats_n, w_fc_ref[...],
                               preferred_element_type=jnp.float32)
                       + b_fc_ref[...]).astype(logits_ref.dtype)


def _choose_k_tiling(F_pad, td, B, *, tile_bytes_target, vmem_stream_cap):
    """Pick (tk, n_k): tk is a multiple of 128 that divides F_pad exactly
    (no ragged / wasted zero-streaming K tiles), targeting ~tile_bytes_target
    streamed bytes per grid step, clamped so double-buffered streams fit."""
    n_units = F_pad // _LANE
    bytes_per_unit = _LANE * (td * 2 + B * 2)       # bf16 w_enc tile + bf16 x tile
    divisors = [d for d in range(1, n_units + 1) if n_units % d == 0]
    target_nk = max(1, round(n_units * bytes_per_unit / tile_bytes_target))
    n_k = min(divisors, key=lambda d: abs(d - target_nk))
    while 2 * (F_pad // n_k) * (td * 2 + B * 2) > vmem_stream_cap and n_k < n_units:
        n_k = next(d for d in divisors if d > n_k)
    return F_pad // n_k, n_k


def make_image_encoder(w_enc, b_enc, w_fc, b_fc, *, d_split=None,
                       tile_bytes_target=2 << 20):
    """One-time setup (pad + bf16 cast of the weights, static tiling decisions).
    Returns forward(images) -> (logits [B, num_classes], encodings [B, D])."""
    F_dim, D = map(int, w_enc.shape)
    num_classes = int(w_fc.shape[1])
    D_pad = _round_up(D, _LANE)
    NC_pad = _round_up(num_classes, _LANE)
    F_pad = _round_up(F_dim, _LANE)          # pad F to 128 only (no tk-sized waste)

    # ---- one-time weight prep (hoisted out of the per-call path) ----
    w_enc_p = jnp.pad(w_enc, ((0, F_pad - F_dim), (0, D_pad - D))).astype(jnp.bfloat16)
    b_enc_p = jnp.pad(b_enc, (0, D_pad - D)).reshape(1, D_pad).astype(jnp.float32)
    w_fc_p = jnp.pad(w_fc, ((0, D_pad - D), (0, NC_pad - num_classes))).astype(jnp.float32)
    b_fc_p = jnp.pad(b_fc, (0, NC_pad - num_classes)).reshape(1, NC_pad).astype(jnp.float32)

    # Parallel D axis: lets v7x's two TensorCores each stream half of w_enc.
    # Near-neutral on single-TC v5e/v6e (per-step byte target is unchanged).
    if d_split is None:
        d_split = 2 if (D_pad >= 2 * _LANE and D_pad % (2 * _LANE) == 0) else 1
    n_d = d_split
    td = D_pad // n_d

    def _forward(images, w_enc_p, b_enc_p, w_fc_p, b_fc_p):
        B = images.shape[0]
        x = images.reshape(B, F_dim)
        x = jnp.pad(x, ((0, 0), (0, F_pad - F_dim))).astype(jnp.bfloat16)

        tk, n_k = _choose_k_tiling(F_pad, td, B,
                                   tile_bytes_target=tile_bytes_target,
                                   vmem_stream_cap=24 << 20)

        # VMEM budget: double-buffered bf16 streams + f32 bias/output, 2x headroom.
        stream_bytes = 2 * (tk * td * 2 + B * tk * 2)
        resident_bytes = 2 * (td * 4) + 2 * (B * td * 4)
        vmem_limit = int(min(max(2 * (stream_bytes + resident_bytes), 4 << 20),
                             48 << 20))

        cost = pl.CostEstimate(
            flops=2 * B * F_pad * D_pad,
            transcendentals=0,
            bytes_accessed=int(n_d * B * F_pad * 2 + F_pad * D_pad * 2
                               + D_pad * 4 + B * D_pad * 4))

        feats = pl.pallas_call(
            _encode_kernel,
            out_shape=jax.ShapeDtypeStruct((B, D_pad), jnp.float32),
            grid=(n_d, n_k),
            in_specs=[
                pl.BlockSpec((B, tk), lambda d, k: (0, k)),      # x tile, streamed
                pl.BlockSpec((tk, td), lambda d, k: (k, d)),     # w_enc tile, streamed
                pl.BlockSpec((1, td), lambda d, k: (0, d)),      # b_enc slice
            ],
            out_specs=pl.BlockSpec((B, td), lambda d, k: (0, d)),  # resident f32 acc
            compiler_params=pltpu.CompilerParams(
                dimension_semantics=("parallel", "arbitrary"),
                vmem_limit_bytes=vmem_limit),
            cost_estimate=cost,
        )(x, w_enc_p, b_enc_p)

        # Tiny epilogue kernel: whole-array blocks, single step.
        logits_p, enc_p = pl.pallas_call(
            _norm_fc_kernel,
            out_shape=(jax.ShapeDtypeStruct((B, NC_pad), jnp.float32),
                       jax.ShapeDtypeStruct((B, D_pad), jnp.float32)),
        )(feats, w_fc_p, b_fc_p)

        return logits_p[:, :num_classes], enc_p[:, :D]

    fwd = jax.jit(_forward)

    def forward(images):
        # TODO(synk): when batch grows, add an M ("parallel") grid axis (tm=256
        #             on v6e/v7x, 128 on v5e) so the streamed weight is reused
        #             across batch tiles.
        return fwd(images, w_enc_p, b_enc_p, w_fc_p, b_fc_p)

    return forward


def _reference(images, w_enc, b_enc, w_fc, b_fc):
    """Pure-JAX reference (same bf16 cast on the streamed matmul as the kernel)."""
    B = images.shape[0]
    x = images.reshape(B, -1).astype(jnp.bfloat16)
    feats = jnp.dot(x, w_enc.astype(jnp.bfloat16),
                    preferred_element_type=jnp.float32) + b_enc
    denom = jnp.maximum(jnp.linalg.norm(feats, axis=-1, keepdims=True), 1e-12)
    feats_n = feats / denom
    logits = jnp.dot(feats_n, w_fc, preferred_element_type=jnp.float32) + b_fc
    return logits, feats_n


def _run_case(key, B, C, H, W, D, num_classes, atol, rtol):
    F_dim = C * H * W
    k_img, k_we, k_be, k_wf, k_bf = jax.random.split(key, 5)

    images = jax.random.normal(k_img, (B, C, H, W), dtype=jnp.float32)
    # Deterministic synthetic encoder params (shapes from __init__ / forward).
    w_enc = jax.random.normal(k_we, (F_dim, D), dtype=jnp.float32) * 0.02
    b_enc = jax.random.normal(k_be, (D,), dtype=jnp.float32) * 0.02
    # fc1: nn.Linear(D, num_classes) -> weight [num_classes, D]; stored transposed.
    w_fc = jax.random.normal(k_wf, (D, num_classes), dtype=jnp.float32) * 0.02
    b_fc = jax.random.normal(k_bf, (num_classes,), dtype=jnp.float32) * 0.02

    forward = make_image_encoder(w_enc, b_enc, w_fc, b_fc)
    logits, enc = forward(images)
    jax.block_until_ready((logits, enc))

    ref_logits, ref_enc = _reference(images, w_enc, b_enc, w_fc, b_fc)
    assert logits.shape == (B, num_classes) and enc.shape == (B, D)
    assert jnp.allclose(logits, ref_logits, atol=atol, rtol=rtol), (
        float(jnp.max(jnp.abs(logits - ref_logits))))
    assert jnp.allclose(enc, ref_enc, atol=atol, rtol=rtol), (
        float(jnp.max(jnp.abs(enc - ref_enc))))


if __name__ == "__main__":
    key = jax.random.PRNGKey(0)
    k0, k1 = jax.random.split(key)
    # Small shapes consistent with the module's forward (single-step path).
    _run_case(k0, B=2, C=4, H=16, W=16, D=32, num_classes=8, atol=1e-3, rtol=1e-2)
    # Larger case exercising the K-tiled, D-split weight-streaming path.
    _run_case(k1, B=2, C=3, H=64, W=64, D=512, num_classes=1000, atol=2e-3, rtol=1e-2)
    print("KERNEL_OK")
</pallas_src>

<mosaic_0001>
module attributes {stable_mosaic.version = 11 : i64} {
  func.func @_norm_fc_kernel(%arg0: memref<2x128xf32, #tpu.memory_space<vmem>>, %arg1: memref<128x128xf32, #tpu.memory_space<vmem>>, %arg2: memref<1x128xf32, #tpu.memory_space<vmem>>, %arg3: memref<2x128xf32, #tpu.memory_space<vmem>>, %arg4: memref<2x128xf32, #tpu.memory_space<vmem>>) attributes {dimension_semantics = [], scalar_prefetch = 0 : i64, scratch_operands = 0 : i64, tpu.core_type = #tpu.core_type<tc>} {
    %c0 = arith.constant 0 : index
    %c0_0 = arith.constant 0 : index
    %0 = vector.load %arg0[%c0, %c0_0] : memref<2x128xf32, #tpu.memory_space<vmem>>, vector<2x128xf32>
    %1 = arith.mulf %0, %0 : vector<2x128xf32>
    %cst = arith.constant dense<0.000000e+00> : vector<2xf32>
    %2 = vector.multi_reduction <add>, %1, %cst [1] : vector<2x128xf32> to vector<2xf32>
    %3 = vector.shape_cast %2 : vector<2xf32> to vector<2x1xf32>
    %cst_1 = arith.constant 1.000000e-24 : f32
    %4 = vector.broadcast %cst_1 : f32 to vector<2x1xf32>
    %5 = arith.maximumf %3, %4 : vector<2x1xf32>
    %6 = math.rsqrt %5 : vector<2x1xf32>
    %7 = vector.broadcast %6 : vector<2x1xf32> to vector<2x128xf32>
    %8 = arith.mulf %0, %7 : vector<2x128xf32>
    %c0_2 = arith.constant 0 : index
    %c0_3 = arith.constant 0 : index
    %9 = vector.load %arg4[%c0_2, %c0_3] : memref<2x128xf32, #tpu.memory_space<vmem>>, vector<2x128xf32>
    tpu.vector_store %arg4[%c0_2, %c0_3], %8 {strides = array<i32>} : memref<2x128xf32, #tpu.memory_space<vmem>>, vector<2x128xf32>,
    %c0_4 = arith.constant 0 : index
    %c0_5 = arith.constant 0 : index
    %10 = vector.load %arg1[%c0_4, %c0_5] : memref<128x128xf32, #tpu.memory_space<vmem>>, vector<128x128xf32>
    %cst_6 = arith.constant dense<0.000000e+00> : vector<2x128xf32>
    %11 = tpu.matmul %8, %10, %cst_6 {dimension_numbers = #tpu.dot_dimension_numbers<[1], [0], [0], [1], [0, 0, 1, 1], [], []>} : vector<2x128xf32>, vector<128x128xf32>, vector<2x128xf32> -> vector<2x128xf32>
    %c0_7 = arith.constant 0 : index
    %c0_8 = arith.constant 0 : index
    %12 = vector.load %arg2[%c0_7, %c0_8] : memref<1x128xf32, #tpu.memory_space<vmem>>, vector<1x128xf32>
    %13 = vector.broadcast %12 : vector<1x128xf32> to vector<2x128xf32>
    %14 = arith.addf %11, %13 : vector<2x128xf32>
    %c0_9 = arith.constant 0 : index
    %c0_10 = arith.constant 0 : index
    %15 = vector.load %arg3[%c0_9, %c0_10] : memref<2x128xf32, #tpu.memory_space<vmem>>, vector<2x128xf32>
    tpu.vector_store %arg3[%c0_9, %c0_10], %14 {strides = array<i32>} : memref<2x128xf32, #tpu.memory_space<vmem>>, vector<2x128xf32>,
    return
  }
}

module attributes {stable_mosaic.version = 11 : i64} {
  func.func @_encode_kernel(%arg0: i32, %arg1: i32, %arg2: memref<2x1024xbf16, #tpu.memory_space<vmem>>, %arg3: memref<1024x128xbf16, #tpu.memory_space<vmem>>, %arg4: memref<1x128xf32, #tpu.memory_space<vmem>>, %arg5: memref<2x128xf32, #tpu.memory_space<vmem>>) attributes {dimension_semantics = [#tpu.dimension_semantics<parallel>, #tpu.dimension_semantics<arbitrary>], iteration_bounds = array<i64: 1, 1>, scalar_prefetch = 0 : i64, scratch_operands = 0 : i64, tpu.core_type = #tpu.core_type<tc>, window_params = [{transform_indices = @transform_0, window_bounds = array<i64: 2, 1024>}, {transform_indices = @transform_1, window_bounds = array<i64: 1024, 128>}, {transform_indices = @transform_2, window_bounds = array<i64: 1, 128>}, {transform_indices = @transform_3, window_bounds = array<i64: 2, 128>}]} {
    %c0_i32 = arith.constant 0 : i32
    %0 = arith.cmpi eq, %arg1, %c0_i32 : i32
    %1 = arith.extui %0 : i1 to i32
    %c0_i32_0 = arith.constant 0 : i32
    %2 = arith.cmpi ne, %1, %c0_i32_0 : i32
    scf.if %2 {
      %c0_8 = arith.constant 0 : index
      %c0_9 = arith.constant 0 : index
      %9 = vector.load %arg4[%c0_8, %c0_9] : memref<1x128xf32, #tpu.memory_space<vmem>>, vector<1x128xf32>
      %10 = vector.shape_cast %9 : vector<1x128xf32> to vector<1x128xf32>
      %11 = vector.broadcast %10 : vector<1x128xf32> to vector<2x128xf32>
      %c0_10 = arith.constant 0 : index
      %c0_11 = arith.constant 0 : index
      %12 = vector.load %arg5[%c0_10, %c0_11] : memref<2x128xf32, #tpu.memory_space<vmem>>, vector<2x128xf32>
      tpu.vector_store %arg5[%c0_10, %c0_11], %11 {strides = array<i32>} : memref<2x128xf32, #tpu.memory_space<vmem>>, vector<2x128xf32>,
    } else {
    }
    %c0 = arith.constant 0 : index
    %c0_1 = arith.constant 0 : index
    %3 = vector.load %arg5[%c0, %c0_1] : memref<2x128xf32, #tpu.memory_space<vmem>>, vector<2x128xf32>
    %c0_2 = arith.constant 0 : index
    %c0_3 = arith.constant 0 : index
    %4 = vector.load %arg2[%c0_2, %c0_3] : memref<2x1024xbf16, #tpu.memory_space<vmem>>, vector<2x1024xbf16>
    %c0_4 = arith.constant 0 : index
    %c0_5 = arith.constant 0 : index
    %5 = vector.load %arg3[%c0_4, %c0_5] : memref<1024x128xbf16, #tpu.memory_space<vmem>>, vector<1024x128xbf16>
    %cst = arith.constant dense<0.000000e+00> : vector<2x128xf32>
    %6 = tpu.matmul %4, %5, %cst {dimension_numbers = #tpu.dot_dimension_numbers<[1], [0], [0], [1], [0, 0, 1, 1], [], []>} : vector<2x1024xbf16>, vector<1024x128xbf16>, vector<2x128xf32> -> vector<2x128xf32>
    %7 = arith.addf %3, %6 : vector<2x128xf32>
    %c0_6 = arith.constant 0 : index
    %c0_7 = arith.constant 0 : index
    %8 = vector.load %arg5[%c0_6, %c0_7] : memref<2x128xf32, #tpu.memory_space<vmem>>, vector<2x128xf32>
    tpu.vector_store %arg5[%c0_6, %c0_7], %7 {strides = array<i32>} : memref<2x128xf32, #tpu.memory_space<vmem>>, vector<2x128xf32>,
    return
  }
  func.func @transform_0(%arg0: i32, %arg1: i32) -> (i32, i32) {
    %c0_i32 = arith.constant 0 : i32
    %c0_i32_0 = arith.constant 0 : i32
    return %c0_i32, %arg1 : i32, i32
  }
  func.func @transform_1(%arg0: i32, %arg1: i32) -> (i32, i32) {
    %c0_i32 = arith.constant 0 : i32
    return %arg1, %arg0 : i32, i32
  }
  func.func @transform_2(%arg0: i32, %arg1: i32) -> (i32, i32) {
    %c0_i32 = arith.constant 0 : i32
    %c0_i32_0 = arith.constant 0 : i32
    return %c0_i32, %arg0 : i32, i32
  }
  func.func @transform_3(%arg0: i32, %arg1: i32) -> (i32, i32) {
    %c0_i32 = arith.constant 0 : i32
    %c0_i32_0 = arith.constant 0 : i32
    return %c0_i32, %arg0 : i32, i32
  }
}

</mosaic_0001>

<bundles_post_ra>
// kernel: _forward.3
= control target key start
LH: loop header
LB: loop body
LE: loop exit
PB: predicated region body
PF: predicated region fallthrough
CT: control target
= control target key end

     0   :  { %10 = vsyncpa [#allocation3], 0  ;;  %vm20_vm0 = vcmask 1041408   ;;  %v282_v4 = vmov 0.0|0.0   ;;  %s390_s0 = inlined_call_operand.vmem [shape: f32[2,128], index: 0, kind: input, shape index: {}]   ;;  %s391_s1 = inlined_call_operand.vmem [shape: f32[128,128], index: 1, kind: input, shape index: {}]   ;;  %s392_s2 = inlined_call_operand.vmem [shape: f32[1,128], index: 2, kind: input, shape index: {}]   ;;  %s393_s3 = inlined_call_operand.hbm [shape: f32[2,128], index: 3, kind: output, shape index: {0}]   ;;  %s394_s4 = inlined_call_operand.hbm [shape: f32[2,128], index: 4, kind: output, shape index: {1}]  }
   0x1   :  { %v18_v0 = vld [vmem:[%s390_s0] sm:$0x3]  ;;  %v29_v2 = vld [vmem:[%s391_s1 + $0x8] sm:$0xff]  ;;  %203 = vmatprep.subr.bf16.mxu0 %v282_v4  ;;  %v30_v6 = vld [vmem:[%s391_s1 + $0x10] sm:$0xff] }
   0x2   :  { %v28_v1 = vld [vmem:[%s391_s1] sm:$0xff]  ;;  %v19_v3 = vmul.f32 %v18_v0, %v18_v0  ;;  %v31_v7 = vld [vmem:[%s391_s1 + $0x18] sm:$0xff] }
   0x3   :  { %v204_v5 = vpack.c.bf16 %v29_v2, %v28_v1  ;;  %v207_v9 = vpack.c.bf16 %v31_v7, %v30_v6 }
   0x4   :  { %v21_v8 = vsel %vm20_vm0, %v19_v3, 0.0 }
   0x5   :  { %205 = vmatpush3.bf16.msra.mxu0 %v204_v5 }
   0x6   :  { %11 = vsyncpa [#allocation5], 0  ;;  %22 = vadd.xlane.f32.xlu0 %v21_v8  ;;  %206 = vmatprep.subr.bf16.mxu0 %v282_v4  ;;  %v32_v10 = vld [vmem:[%s391_s1 + $0x20] sm:$0xff]  ;;  %v33_v11 = vld [vmem:[%s391_s1 + $0x28] sm:$0xff]  ;;  %vm283_vm1 = vmmov 0   ;;  %v284_v24 = vmov 0.0  }
   0x7   :  { %v210_v12 = vpack.c.bf16 %v33_v11, %v32_v10  ;;  %v34_v13 = vld [vmem:[%s391_s1 + $0x30] sm:$0xff]  ;;  %v35_v14 = vld [vmem:[%s391_s1 + $0x38] sm:$0xff]  ;;  %v36_v16 = vld [vmem:[%s391_s1 + $0x40] sm:$0xff]  ;;  %200 = vmatprep.mubr.msk.f32.mxu0 %vm283_vm1, %v284_v24  ;;  %s285_s22 = smov [#allocation4]  }
   0x8   :  { %v213_v15 = vpack.c.bf16 %v35_v14, %v34_v13  ;;  %v37_v17 = vld [vmem:[%s391_s1 + $0x48] sm:$0xff]  ;;  %v38_v19 = vld [vmem:[%s391_s1 + $0x50] sm:$0xff]  ;;  %v39_v20 = vld [vmem:[%s391_s1 + $0x58] sm:$0xff]  ;;  %s138_s23 = sshll.u32 %s285_s22, 4  ;;  %s139_s23 = int_to_ptr.vmem [resolvable:$true] %s138_s23 }
   0x9   :  { %208 = vmatpush3.bf16.msra.mxu0 %v207_v9  ;;  %v216_v18 = vpack.c.bf16 %v37_v17, %v36_v16  ;;  %v219_v21 = vpack.c.bf16 %v39_v20, %v38_v19  ;;  %v40_v22 = vld [vmem:[%s391_s1 + $0x60] sm:$0xff]  ;;  %v41_v23 = vld [vmem:[%s391_s1 + $0x68] sm:$0xff]  ;;  %v42_v26 = vld [vmem:[%s391_s1 + $0x70] sm:$0xff]  ;;  %s234_s24 = scalar_lea.vmem %s139_s23, 32  ;;  %p239_p1 = scmp.lt.s32.totalorder %s139_s23, %s139_s23 }
   0xa   :  { %209 = vmatprep.subr.bf16.mxu0 %v282_v4  ;;  %v222_v25 = vpack.c.bf16 %v41_v23, %v40_v22  ;;  %v43_v27 = vld [vmem:[%s391_s1 + $0x78] sm:$0xff]  ;;  %p235_p0 = scmp.ne.s32.totalorder %s139_s23, %s234_s24  ;;  %p240_p2 = scmp.lt.s32.totalorder %s234_s24, %s234_s24 }
   0xb   :  { %v225_v28 = vpack.c.bf16 %v43_v27, %v42_v26 }
   0xc   :  { %p241_p3 = por %p240_p2, %p239_p1 }
   0xd   :  { %211 = vmatpush3.bf16.msra.mxu0 %v210_v12 }
   0xe   :  { %212 = vmatprep.subr.bf16.mxu0 %v282_v4  ;;  %p242_p4 = pnand %p241_p3, %p235_p0 }
  0x11   :  { %214 = vmatpush3.bf16.msra.mxu0 %v213_v15 }
  0x12   :  { %215 = vmatprep.subr.bf16.mxu0 %v282_v4 }
  0x15   :  { %217 = vmatpush3.bf16.msra.mxu0 %v216_v18 }
  0x16   :  { %218 = vmatprep.subr.bf16.mxu0 %v282_v4 }
  0x19   :  { %220 = vmatpush3.bf16.msra.mxu0 %v219_v21 }
  0x1a   :  { %221 = vmatprep.subr.bf16.mxu0 %v282_v4 }
  0x1d   :  { %223 = vmatpush3.bf16.msra.mxu0 %v222_v25 }
  0x1e   :  { %224 = vmatprep.subr.bf16.mxu0 %v282_v4 }
  0x21   :  { %226 = vmatpush3.bf16.msra.mxu0 %v225_v28 }
  0x93   :  { %v23_v29 = vpop.xlane.xlu0 %22 }
  0x94   :  { %v24_v30 = vmax.f32 %v23_v29, 1e-24 }
  0x96   :  { %232 = vrsqrt.f32 %v24_v30 }
  0xa0   :  { %v233_v31 = vpop.eup %232 }
  0xa1   :  { %v26_v32 = vmul.f32 %v233_v31, %v18_v0 }
  0xa3   :  { %201 = vmatmul.mubr.f32.vlgmr.msra.gmra.mrb[0].mxu0 %v26_v32  ;;  %27 = vst [vmem:[#allocation4] sm:$0x3] %v26_v32 }
  0xa4   :  { %245 = shalt.err (!%p242_p4)
}
  0xa5   :  { %s246_s25 = scalar_lea.hbm %s394_s4, 32 }
  0xa6   :  { %p247_p5 = scmp.ne.s32.totalorder %s394_s4, %s246_s25  ;;  %p250_p6 = scmp.lt.u32.totalorder %s246_s25, %s394_s4 }
  0xa8   :  { %p252_p7 = pnand %p250_p6, %p247_p5 }
  0xaa   :  { %255 = shalt.err (!%p252_p7)
}
  0xab   :  { %141 = dma.vmem_to_hbm [thread:$0]  %s139_s23, 32, %s394_s4, [#allocation5]   ;;  %v150_v33 = vld [vmem:[%s392_s2] ss:$0 sm:$0xff] }
  0xac   :  { %s286_s8 = smov [#allocation2]  }
  0xad   :  { %s128_s9 = sshll.u32 %s286_s8, 4  ;;  %s129_s9 = int_to_ptr.vmem [resolvable:$true] %s128_s9 }
  0xae   :  { %s256_s10 = scalar_lea.vmem %s129_s9, 32  ;;  %p261_p9 = scmp.lt.s32.totalorder %s129_s9, %s129_s9 }
  0xaf   :  { %p257_p8 = scmp.ne.s32.totalorder %s129_s9, %s256_s10  ;;  %p262_p10 = scmp.lt.s32.totalorder %s256_s10, %s256_s10 }
  0xb1   :  { %p263_p11 = por %p262_p10, %p261_p9 }
  0xb3   :  { %p264_p12 = pnand %p263_p11, %p257_p8 }
 0x176   :  { %v117_v34 = vpop.f32.mrb[0].mxu0 }
 0x177   :  { %v118_v35 = vadd.f32 %v150_v33, %v117_v34  ;;  %v202_v36 = vpop.f32.mrb[1].mxu0 }
 0x179   :  { %121 = vst [vmem:[#allocation2] sm:$0x3] %v118_v35 }
 0x17a   :  { %267 = shalt.err (!%p264_p12)
}
 0x17b   :  { %s268_s12 = scalar_lea.hbm %s393_s3, 32 }
 0x17c   :  { %p269_p13 = scmp.ne.s32.totalorder %s393_s3, %s268_s12  ;;  %p272_p0 = scmp.lt.u32.totalorder %s268_s12, %s393_s3 }
 0x17e   :  { %p274_p1 = pnand %p272_p0, %p269_p13 }
 0x180   :  { %277 = shalt.err (!%p274_p1)
}
 0x181   :  { %131 = dma.vmem_to_hbm [thread:$0]  %s129_s9, 32, %s393_s3, [#allocation3]  }
 0x182   :  { %278 = dma.done.wait [#allocation3], 32  }
 0x183   :  { %279 = vsyncadd [#allocation3], 4294967264 }
 0x184   :  { %280 = dma.done.wait [#allocation5], 32  }
 0x185   :  { %281 = vsyncadd [#allocation5], 4294967264 }
 0x186   :  { %148 = vsyncpa [#allocation3], 1 }
 0x187   :  { %149 = vsyncpa [#allocation5], 1 }

// kernel: _forward.2
= control target key start
LH: loop header
LB: loop body
LE: loop exit
PB: predicated region body
PF: predicated region fallthrough
CT: control target
= control target key end

     0   :  { %8 = vsyncpa [#allocation3], 0  ;;  %s1026_s12 = smov [#allocation2]   ;;  %s1090_s0 = inlined_call_operand.vmem [shape: bf16[2,1024], index: 0, kind: input, shape index: {}]   ;;  %s1091_s1 = inlined_call_operand.hbm [shape: bf16[1024,128], index: 1, kind: input, shape index: {}]   ;;  %s1092_s2 = inlined_call_operand.vmem [shape: f32[1,128], index: 2, kind: input, shape index: {}]   ;;  %s1093_s3 = inlined_call_operand.vmem [shape: f32[2,128], index: 3, kind: output, shape index: {}]  }
   0x1   :  { %s16_s13 = sshll.u32 %s1026_s12, 4  ;;  %s1002_s16 = scalar_lea.hbm %s1091_s1, 8192  ;;  %s17_s13 = int_to_ptr.vmem [resolvable:$true] %s16_s13 }
   0x2   :  { %p1003_p0 = scmp.ne.s32.totalorder %s1091_s1, %s1002_s16  ;;  %p1006_p1 = scmp.lt.u32.totalorder %s1002_s16, %s1091_s1 }
   0x4   :  { %p1008_p2 = pnand %p1006_p1, %p1003_p0 }
   0x6   :  { %1011 = shalt.err (!%p1008_p2)
}
   0x7   :  { %s1012_s21 = scalar_lea.vmem %s17_s13, 8192  ;;  %p1017_p4 = scmp.lt.s32.totalorder %s17_s13, %s17_s13 }
   0x8   :  { %p1013_p3 = scmp.ne.s32.totalorder %s17_s13, %s1012_s21  ;;  %p1018_p5 = scmp.lt.s32.totalorder %s1012_s21, %s1012_s21 }
   0xa   :  { %p1019_p6 = por %p1018_p5, %p1017_p4 }
   0xc   :  { %p1020_p7 = pnand %p1019_p6, %p1013_p3 }
   0xe   :  { %1023 = shalt.err (!%p1020_p7)
}
   0xf   :  { %s1027_s22 = smov 64   ;;  %s1028_s23 = smov 4  }
  0x10   :  { %22 = dma.hbm_to_vmem [thread:$0]  %s1091_s1, 8192, %s17_s13, [#allocation3], %s1027_s22, %s1027_s22, %s1028_s23  }
  0x11   :  { %1024 = dma.done.wait [#allocation3], 8192  }
  0x12   :  { %1025 = vsyncadd [#allocation3], 4294959104  ;;  %v937_v0 = vld [vmem:[#allocation2 + $0x40] sm:$0xff]   ;;  %v941_v4 = vld [vmem:[#allocation2 + $0x48] sm:$0xff]   ;;  %v1029_v22 = vmov 1966171168   ;;  %v176_v24 = vlaneseq }
  0x13   :  { %v938_v1 = vld [vmem:[#allocation2 + $0xc0] sm:$0xff]   ;;  %845 = vmatprep.subr.bf16.mxu0 %v937_v0  ;;  %v942_v5 = vld [vmem:[#allocation2 + $0xc8] sm:$0xff]   ;;  %v945_v8 = vld [vmem:[#allocation2 + $0x50] sm:$0xff]   ;;  %v174_v23 = vunpack.c.l.s4 %v1029_v22 }
  0x14   :  { %v939_v2 = vld [vmem:[#allocation2] sm:$0xff]   ;;  %867 = vmatprep.subr.bf16.mxu1 %v938_v1  ;;  %v943_v6 = vld [vmem:[#allocation2 + $0x8] sm:$0xff]   ;;  %v946_v9 = vld [vmem:[#allocation2 + $0xd0] sm:$0xff]   ;;  %v177_v30 = vshrl.u32 %v176_v24, 7 }
  0x15   :  { %v940_v3 = vld [vmem:[#allocation2 + $0x80] sm:$0xff]   ;;  %846 = vmatpush3.bf16.msra.mxu0 %v939_v2  ;;  %v944_v7 = vld [vmem:[#allocation2 + $0x88] sm:$0xff]   ;;  %v947_v10 = vld [vmem:[#allocation2 + $0x10] sm:$0xff]   ;;  %v175_v29 = vunpack.c.0.s8 %v174_v23 }
  0x16   :  { %868 = vmatpush3.bf16.msra.mxu1 %v940_v3  ;;  %847 = vmatprep.subr.bf16.mxu0 %v941_v4  ;;  %v948_v11 = vld [vmem:[#allocation2 + $0x90] sm:$0xff]   ;;  %v949_v12 = vld [vmem:[#allocation2 + $0x58] sm:$0xff]   ;;  %v953_v16 = vld [vmem:[#allocation2 + $0x60] sm:$0xff]  }
  0x17   :  { %869 = vmatprep.subr.bf16.mxu1 %v942_v5  ;;  %v950_v13 = vld [vmem:[#allocation2 + $0xd8] sm:$0xff]   ;;  %v954_v17 = vld [vmem:[#allocation2 + $0xe0] sm:$0xff]   ;;  %v957_v20 = vld [vmem:[#allocation2 + $0x68] sm:$0xff]   ;;  %v1062_v35 = vsub.s32 %v175_v29, %v177_v30 }
  0x18   :  { %v951_v14 = vld [vmem:[#allocation2 + $0x18] sm:$0xff]   ;;  %v955_v18 = vld [vmem:[#allocation2 + $0x20] sm:$0xff]   ;;  %v958_v21 = vld [vmem:[#allocation2 + $0xe8] sm:$0xff]  }
  0x19   :  { %848 = vmatpush3.bf16.msra.mxu0 %v943_v6  ;;  %v952_v15 = vld [vmem:[#allocation2 + $0x98] sm:$0xff]   ;;  %v956_v19 = vld [vmem:[#allocation2 + $0xa0] sm:$0xff]   ;;  %v959_v25 = vld [vmem:[#allocation2 + $0x28] sm:$0xff]  }
  0x1a   :  { %870 = vmatpush3.bf16.msra.mxu1 %v944_v7  ;;  %849 = vmatprep.subr.bf16.mxu0 %v945_v8  ;;  %v960_v26 = vld [vmem:[#allocation2 + $0xa8] sm:$0xff]   ;;  %v961_v27 = vld [vmem:[#allocation2 + $0x70] sm:$0xff]   ;;  %v965_v33 = vld [vmem:[#allocation2 + $0x78] sm:$0xff]  }
  0x1b   :  { %871 = vmatprep.subr.bf16.mxu1 %v946_v9  ;;  %v962_v28 = vld [vmem:[#allocation2 + $0xf0] sm:$0xff]   ;;  %v966_v34 = vld [vmem:[#allocation2 + $0xf8] sm:$0xff]   ;;  %v42_v38 = vld [vmem:[%s1090_s0] sm:$0xff] }
  0x1c   :  { %v963_v31 = vld [vmem:[#allocation2 + $0x30] sm:$0xff]   ;;  %v967_v36 = vld [vmem:[#allocation2 + $0x38] sm:$0xff]   ;;  %v172_v39 = vcombine.high %v42_v38, %v42_v38  ;;  %v179_v40 = vrot.slane %v42_v38, %v1062_v35  ;;  %v970_v41 = vld [vmem:[#allocation2 + $0x140] sm:$0xff]  }
  0x1d   :  { %850 = vmatpush3.bf16.msra.mxu0 %v947_v10  ;;  %v964_v32 = vld [vmem:[#allocation2 + $0xb0] sm:$0xff]   ;;  %v968_v37 = vld [vmem:[#allocation2 + $0xb8] sm:$0xff]   ;;  %v971_v42 = vld [vmem:[#allocation2 + $0x1c0] sm:$0xff]  }
  0x1e   :  { %872 = vmatpush3.bf16.msra.mxu1 %v948_v11  ;;  %851 = vmatprep.subr.bf16.mxu0 %v949_v12  ;;  %v187_v43 = vcombine.high %v179_v40, %v179_v40  ;;  %v195_v44 = vrot.slane %v179_v40, %v1062_v35  ;;  %v1070_v45 = vrot.slane %v172_v39, %v1062_v35  ;;  %v972_v47 = vld [vmem:[#allocation2 + $0x100] sm:$0xff]   ;;  %v974_v50 = vld [vmem:[#allocation2 + $0x148] sm:$0xff]   ;;  %v978_v57 = vld [vmem:[#allocation2 + $0x150] sm:$0xff]  }
  0x1f   :  { %873 = vmatprep.subr.bf16.mxu1 %v950_v13  ;;  %v973_v52 = vld [vmem:[#allocation2 + $0x180] sm:$0xff]   ;;  %v975_v54 = vld [vmem:[#allocation2 + $0x1c8] sm:$0xff]   ;;  %v979_v59 = vld [vmem:[#allocation2 + $0x1d0] sm:$0xff]  }
  0x20   :  { %v209_v46 = vrot.slane %v187_v43, %v1062_v35  ;;  %v188_v48 = vcombine.high %v1070_v45, %v1070_v45  ;;  %v217_v49 = vcombine.high %v195_v44, %v195_v44  ;;  %v976_v55 = vld [vmem:[#allocation2 + $0x108] sm:$0xff]   ;;  %v980_v60 = vld [vmem:[#allocation2 + $0x110] sm:$0xff]   ;;  %v982_v61 = vld [vmem:[#allocation2 + $0x158] sm:$0xff]  }
  0x21   :  { %852 = vmatpush3.bf16.msra.mxu0 %v951_v14  ;;  %v977_v58 = vld [vmem:[#allocation2 + $0x188] sm:$0xff]   ;;  %v981_v62 = vld [vmem:[#allocation2 + $0x190] sm:$0xff]   ;;  %v983_v63 = vld [vmem:[#allocation2 + $0x1d8] sm:$0xff]  }
  0x22   :  { %874 = vmatpush3.bf16.msra.mxu1 %v952_v15  ;;  %853 = vmatprep.subr.bf16.mxu0 %v953_v16  ;;  %v219_v51 = vcombine.high %v209_v46, %v209_v46  ;;  %v216_v53 = vrot.slane %v188_v48, %v1062_v35  ;;  %v984_v0 = vld [vmem:[#allocation2 + $0x118] sm:$0xff]   ;;  %v986_v1 = vld [vmem:[#allocation2 + $0x160] sm:$0xff]   ;;  %v990_v5 = vld [vmem:[#allocation2 + $0x168] sm:$0xff]  }
  0x23   :  { %875 = vmatprep.subr.bf16.mxu1 %v954_v17  ;;  %645 = vmatprep.mubr.bf16.mxu0 %v209_v46  ;;  %v985_v2 = vld [vmem:[#allocation2 + $0x198] sm:$0xff]   ;;  %v987_v3 = vld [vmem:[#allocation2 + $0x1e0] sm:$0xff]   ;;  %v991_v7 = vld [vmem:[#allocation2 + $0x1e8] sm:$0xff]   ;;  %v202_v17 = vrot.slane %v1070_v45, %v1062_v35 }
  0x24   :  { %685 = vmatprep.mubr.bf16.mxu1 %v219_v51  ;;  %v220_v56 = vcombine.high %v216_v53, %v216_v53  ;;  %v988_v4 = vld [vmem:[#allocation2 + $0x120] sm:$0xff]   ;;  %v992_v8 = vld [vmem:[#allocation2 + $0x128] sm:$0xff]   ;;  %v994_v9 = vld [vmem:[#allocation2 + $0x170] sm:$0xff]  }
  0x25   :  { %854 = vmatpush3.bf16.msra.mxu0 %v955_v18  ;;  %v989_v6 = vld [vmem:[#allocation2 + $0x1a0] sm:$0xff]   ;;  %v993_v10 = vld [vmem:[#allocation2 + $0x1a8] sm:$0xff]   ;;  %v995_v11 = vld [vmem:[#allocation2 + $0x1f0] sm:$0xff]  }
  0x26   :  { %876 = vmatpush3.bf16.msra.mxu1 %v956_v19  ;;  %855 = vmatprep.subr.bf16.mxu0 %v957_v20  ;;  %v996_v12 = vld [vmem:[#allocation2 + $0x130] sm:$0xff]   ;;  %v998_v13 = vld [vmem:[#allocation2 + $0x178] sm:$0xff]   ;;  %v218_v19 = vcombine.high %v202_v17, %v202_v17  ;;  %v780_v20 = vld [vmem:[%s1092_s2] ss:$0 sm:$0xff] }
  0x27   :  { %877 = vmatprep.subr.bf16.mxu1 %v958_v21  ;;  %v997_v14 = vld [vmem:[#allocation2 + $0x1b0] sm:$0xff]   ;;  %v999_v15 = vld [vmem:[#allocation2 + $0x1f8] sm:$0xff]   ;;  %40 = vst [vmem:[%s1093_s3] sm:$0x3] %v780_v20 }
  0x28   :  { %v1000_v16 = vld [vmem:[#allocation2 + $0x138] sm:$0xff]  }
  0x29   :  { %856 = vmatpush3.bf16.msra.mxu0 %v959_v25  ;;  %v1001_v18 = vld [vmem:[#allocation2 + $0x1b8] sm:$0xff]  }
  0x2a   :  { %878 = vmatpush3.bf16.msra.mxu1 %v960_v26  ;;  %857 = vmatprep.subr.bf16.mxu0 %v961_v27 }
  0x2b   :  { %879 = vmatprep.subr.bf16.mxu1 %v962_v28 }
  0x2d   :  { %858 = vmatpush3.bf16.msra.mxu0 %v963_v31 }
  0x2e   :  { %880 = vmatpush3.bf16.msra.mxu1 %v964_v32  ;;  %859 = vmatprep.subr.bf16.mxu0 %v965_v33 }
  0x2f   :  { %881 = vmatprep.subr.bf16.mxu1 %v966_v34 }
  0x31   :  { %860 = vmatpush3.bf16.msra.mxu0 %v967_v36 }
  0x32   :  { %882 = vmatpush3.bf16.msra.mxu1 %v968_v37  ;;  %889 = vmatprep.subr.bf16.mxu0 %v970_v41 }
  0x33   :  { %911 = vmatprep.subr.bf16.mxu1 %v971_v42  ;;  %v41_v42 = vld [vmem:[%s1093_s3] sm:$0x3] }
  0x34   :  { %646 = vmatmul.mubr.bf16.vlgmr.msra.gmra.mrb[0].mxu0 %v195_v44 }
  0x35   :  { %890 = vmatpush3.bf16.msra.mxu0 %v972_v47  ;;  %686 = vmatmul.mubr.bf16.vlgmr.msra.gmra.mrb[0].mxu1 %v217_v49 }
  0x36   :  { %891 = vmatprep.subr.bf16.mxu0 %v974_v50  ;;  %912 = vmatpush3.bf16.msra.mxu1 %v973_v52 }
  0x37   :  { %725 = vmatprep.mubr.bf16.mxu0 %v216_v53  ;;  %913 = vmatprep.subr.bf16.mxu1 %v975_v54 }
  0x38   :  { %765 = vmatprep.mubr.bf16.mxu1 %v220_v56 }
  0x39   :  { %892 = vmatpush3.bf16.msra.mxu0 %v976_v55 }
  0x3a   :  { %893 = vmatprep.subr.bf16.mxu0 %v978_v57  ;;  %914 = vmatpush3.bf16.msra.mxu1 %v977_v58 }
  0x3b   :  { %915 = vmatprep.subr.bf16.mxu1 %v979_v59 }
  0x3d   :  { %894 = vmatpush3.bf16.msra.mxu0 %v980_v60 }
  0x3e   :  { %895 = vmatprep.subr.bf16.mxu0 %v982_v61  ;;  %916 = vmatpush3.bf16.msra.mxu1 %v981_v62 }
  0x3f   :  { %917 = vmatprep.subr.bf16.mxu1 %v983_v63 }
  0x41   :  { %896 = vmatpush3.bf16.msra.mxu0 %v984_v0 }
  0x42   :  { %897 = vmatprep.subr.bf16.mxu0 %v986_v1  ;;  %918 = vmatpush3.bf16.msra.mxu1 %v985_v2 }
  0x43   :  { %919 = vmatprep.subr.bf16.mxu1 %v987_v3 }
  0x45   :  { %898 = vmatpush3.bf16.msra.mxu0 %v988_v4 }
  0x46   :  { %899 = vmatprep.subr.bf16.mxu0 %v990_v5  ;;  %920 = vmatpush3.bf16.msra.mxu1 %v989_v6 }
  0x47   :  { %921 = vmatprep.subr.bf16.mxu1 %v991_v7 }
  0x49   :  { %900 = vmatpush3.bf16.msra.mxu0 %v992_v8 }
  0x4a   :  { %901 = vmatprep.subr.bf16.mxu0 %v994_v9  ;;  %922 = vmatpush3.bf16.msra.mxu1 %v993_v10 }
  0x4b   :  { %923 = vmatprep.subr.bf16.mxu1 %v995_v11 }
  0x4d   :  { %902 = vmatpush3.bf16.msra.mxu0 %v996_v12 }
  0x4e   :  { %903 = vmatprep.subr.bf16.mxu0 %v998_v13  ;;  %924 = vmatpush3.bf16.msra.mxu1 %v997_v14 }
  0x4f   :  { %925 = vmatprep.subr.bf16.mxu1 %v999_v15 }
  0x51   :  { %904 = vmatpush3.bf16.msra.mxu0 %v1000_v16 }
  0x52   :  { %926 = vmatpush3.bf16.msra.mxu1 %v1001_v18 }
  0x54   :  { %726 = vmatmul.mubr.bf16.vlgmr.msra.gmra.mrb[4].mxu0 %v202_v17 }
  0x55   :  { %766 = vmatmul.mubr.bf16.vlgmr.msra.gmra.mrb[4].mxu1 %v218_v19 }
 0x107   :  { %v861_v21 = vpop.f32.mrb[0].mxu0 }
 0x108   :  { %v862_v22 = vpop.f32.mrb[1].mxu0  ;;  %v883_v23 = vpop.f32.mrb[0].mxu1 }
 0x109   :  { %v863_v24 = vadd.f32 %v862_v22, %v861_v21  ;;  %v864_v25 = vpop.f32.mrb[2].mxu0  ;;  %v884_v26 = vpop.f32.mrb[1].mxu1 }
 0x10a   :  { %v865_v27 = vpop.f32.mrb[3].mxu0  ;;  %v885_v28 = vadd.f32 %v884_v26, %v883_v23  ;;  %v886_v29 = vpop.f32.mrb[2].mxu1 }
 0x10b   :  { %v887_v30 = vpop.f32.mrb[3].mxu1 }
 0x10c   :  { %v688_v31 = vadd.f32 %v885_v28, %v863_v24 }
 0x127   :  { %v905_v32 = vpop.f32.mrb[4].mxu0 }
 0x128   :  { %v906_v33 = vpop.f32.mrb[5].mxu0  ;;  %v927_v34 = vpop.f32.mrb[4].mxu1 }
 0x129   :  { %v907_v35 = vadd.f32 %v906_v33, %v905_v32  ;;  %v908_v36 = vpop.f32.mrb[6].mxu0  ;;  %v928_v37 = vpop.f32.mrb[5].mxu1 }
 0x12a   :  { %v909_v38 = vpop.f32.mrb[7].mxu0  ;;  %v929_v40 = vadd.f32 %v928_v37, %v927_v34  ;;  %v930_v41 = vpop.f32.mrb[6].mxu1 }
 0x12b   :  { %v728_v39 = vadd.f32 %v907_v35, %v688_v31  ;;  %v931_v43 = vpop.f32.mrb[7].mxu1 }
 0x12d   :  { %v768_v44 = vadd.f32 %v929_v40, %v728_v39 }
 0x12f   :  { %v773_v45 = vadd.f32 %v768_v44, %v41_v42 }
 0x131   :  { %774 = vst [vmem:[%s1093_s3] sm:$0x3] %v773_v45 }
 0x132   :  { %779 = vsyncpa [#allocation3], 1 }

</bundles_post_ra>
